<compile_context>
chip_gen: v6e
topology: v6e:2x2x1
jax: 0.10.0
libtpu: 0.0.40
codegen_flags: <defaults>
</compile_context>

<pallas_src>
import jax
import jax.numpy as jnp
from jax.experimental import pallas as pl
from jax.experimental.pallas import tpu as pltpu

LANE = 128      # vreg lane width (last dim)
SUBLANE = 8     # vreg sublane width (second-last dim)


def _round_up(n, m):
    return ((n + m - 1) // m) * m


def mlp_kernel(x_ref, w1_ref, b1_ref, w2_ref, b2_ref, o_ref):
    # Cast the streamed f32 activations to the MXU dtype at the boundary only.
    x = x_ref[...].astype(w1_ref.dtype)
    # fc1 on the MXU with f32 accumulation.
    h = jnp.dot(x, w1_ref[...], preferred_element_type=jnp.float32)
    # Bias add + ReLU in f32 on the VPU.
    h = jnp.maximum(h + b1_ref[...], 0.0)
    # fc2 on the MXU (activation re-cast at the boundary), f32 accumulation.
    y = jnp.dot(h.astype(w2_ref.dtype), w2_ref[...],
                preferred_element_type=jnp.float32)
    o_ref[...] = (y + b2_ref[...]).astype(o_ref.dtype)


def simple_mlp_forward(x, w1, b1, w2, b2, *, block_b=512,
                       compute_dtype=jnp.bfloat16):
    """Fused fc1 -> ReLU -> fc2.

    x:  (B, input_dim)            float32 (streamed unpadded)
    w1: (input_dim, hidden_dim)   stored (in_features, out_features)
    b1: (hidden_dim,) or (1, hidden_dim)
    w2: (hidden_dim, output_dim)
    b2: (output_dim,) or (1, output_dim)
    Returns (B, output_dim) in x.dtype.
    """
    B, in_dim = x.shape
    hidden = w1.shape[1]
    out_dim = w2.shape[1]

    b1 = jnp.reshape(b1, (1, hidden)).astype(jnp.float32)
    b2 = jnp.reshape(b2, (1, out_dim)).astype(jnp.float32)

    # Large hidden dims: zero-pad to a multiple of 256 so the inner MXU dim
    # fills v6e/v7x's 2x256x256 arrays.  Exact: padded w1 cols / b1 lanes are
    # 0 -> relu(0)=0 -> padded w2 rows contribute nothing.  Small hidden
    # (<=128, e.g. the default 64) is left untouched: full-array-dim
    # BlockSpecs are legal and the kernel is memory-bound there anyway.
    hid_p = hidden if hidden <= LANE else _round_up(hidden, 256)
    if hid_p != hidden:
        w1 = jnp.pad(w1, ((0, 0), (0, hid_p - hidden)))
        b1 = jnp.pad(b1, ((0, 0), (0, hid_p - hidden)))
        w2 = jnp.pad(w2, ((0, hid_p - hidden), (0, 0)))
    w1 = w1.astype(compute_dtype)
    w2 = w2.astype(compute_dtype)

    # Batch tile: big enough to amortize per-step overhead (~0.35us), capped
    # at ceil(B/2) (sublane-rounded) so grid_b >= 2 whenever B allows, letting
    # the "parallel" axis feed both v7x TensorCores.
    tb_cap = _round_up(pl.cdiv(B, 2), SUBLANE)
    tb = max(SUBLANE, min(_round_up(block_b, SUBLANE), tb_cap))
    b_p = _round_up(B, tb)
    grid_b = b_p // tb
    x_in = x if b_p == B else jnp.pad(x, ((0, b_p - B), (0, 0)))

    out_dtype = x.dtype
    cost = pl.CostEstimate(
        flops=2 * B * (in_dim * hidden + hidden * out_dim),
        transcendentals=0,
        bytes_accessed=int(
            x_in.size * x_in.dtype.itemsize
            + w1.size * w1.dtype.itemsize
            + w2.size * w2.dtype.itemsize
            + (b1.size + b2.size) * 4
            + b_p * out_dim * jnp.dtype(out_dtype).itemsize),
    )

    def run(single_buffer_weights):
        resident_kwargs = (dict(pipeline_mode=pl.Buffered(1))
                           if single_buffer_weights else {})
        n_wbuf = 1 if single_buffer_weights else 2
        wbytes = jnp.dtype(compute_dtype).itemsize
        vmem_est = (
            n_wbuf * (in_dim * hid_p + hid_p * out_dim) * wbytes   # weights
            + n_wbuf * (hid_p + out_dim) * 4                       # f32 biases
            + 2 * tb * in_dim * x_in.dtype.itemsize                # x tiles (dbl buf)
            + 2 * tb * out_dim * jnp.dtype(out_dtype).itemsize     # out tiles
            + tb * hid_p * 4 + tb * out_dim * 4                    # h / y f32 temps
        )
        cparams = dict(dimension_semantics=("parallel",))
        if vmem_est > 24 * 1024 * 1024:
            # NOTE: once the resident weights alone exceed ~24-28 MiB (v7x has
            # 64 MiB VMEM), the right move is an extra "arbitrary" hidden-dim
            # grid axis with an f32 VMEM accumulator instead of keeping both
            # weight matrices fully resident.
            cparams["vmem_limit_bytes"] = min(int(vmem_est * 3 // 2),
                                              64 * 1024 * 1024)

        return pl.pallas_call(
            mlp_kernel,
            out_shape=jax.ShapeDtypeStruct((b_p, out_dim), out_dtype),
            grid=(grid_b,),
            in_specs=[
                # x: streamed over batch at its real width (full-array last dim).
                pl.BlockSpec((tb, in_dim), lambda i: (i, 0)),
                # Weights / biases: constant index_map -> VMEM-resident.
                pl.BlockSpec((in_dim, hid_p), lambda i: (0, 0), **resident_kwargs),
                pl.BlockSpec((1, hid_p), lambda i: (0, 0), **resident_kwargs),
                pl.BlockSpec((hid_p, out_dim), lambda i: (0, 0), **resident_kwargs),
                pl.BlockSpec((1, out_dim), lambda i: (0, 0), **resident_kwargs),
            ],
            out_specs=pl.BlockSpec((tb, out_dim), lambda i: (i, 0)),
            compiler_params=pltpu.CompilerParams(**cparams),
            cost_estimate=cost,
        )(x_in, w1, b1, w2, b2)

    try:
        out = run(single_buffer_weights=True)
    except Exception:
        # pl.Buffered(1) hint rejected by this JAX/Mosaic build; retry with
        # default double-buffering of the resident operands.
        out = run(single_buffer_weights=False)

    return out if b_p == B else out[:B]


def init_params(key, input_dim=3, hidden_dim=64, output_dim=3,
                dtype=jnp.float32):
    """nn.Linear default init: U(-1/sqrt(fan_in), 1/sqrt(fan_in)); weights
    stored as (in_features, out_features) = transpose of PyTorch layout."""
    k1, k2, k3, k4 = jax.random.split(key, 4)
    bound1 = 1.0 / (input_dim ** 0.5)
    bound2 = 1.0 / (hidden_dim ** 0.5)
    w1 = jax.random.uniform(k1, (input_dim, hidden_dim), dtype,
                            minval=-bound1, maxval=bound1)
    b1 = jax.random.uniform(k2, (1, hidden_dim), dtype,
                            minval=-bound1, maxval=bound1)
    w2 = jax.random.uniform(k3, (hidden_dim, output_dim), dtype,
                            minval=-bound2, maxval=bound2)
    b2 = jax.random.uniform(k4, (1, output_dim), dtype,
                            minval=-bound2, maxval=bound2)
    return w1, b1, w2, b2


def _reference(x, w1, b1, w2, b2):
    return jnp.maximum(x @ w1 + b1, 0.0) @ w2 + b2


if __name__ == "__main__":
    key = jax.random.PRNGKey(0)
    k_x, k_p, k_x2 = jax.random.split(key, 3)

    input_dim, hidden_dim, output_dim = 3, 64, 3
    w1, b1, w2, b2 = init_params(k_p, input_dim, hidden_dim, output_dim)

    # Case 1: tiny batch (single grid step).
    batch = 8
    x = jax.random.normal(k_x, (batch, input_dim), jnp.float32)
    out = simple_mlp_forward(x, w1, b1, w2, b2)
    jax.block_until_ready(out)
    ref = _reference(x, w1, b1, w2, b2)
    assert out.shape == (batch, output_dim)
    # bf16 at the MXU boundary -> compare against f32 ref with bf16-level tol.
    assert jnp.allclose(out, ref, atol=2e-2, rtol=2e-2), float(
        jnp.max(jnp.abs(out - ref)))

    # Case 2: larger batch exercising the batch grid (tb=256 -> 2 grid steps).
    batch2 = 512
    x2 = jax.random.normal(k_x2, (batch2, input_dim), jnp.float32)
    out2 = simple_mlp_forward(x2, w1, b1, w2, b2, block_b=512)
    jax.block_until_ready(out2)
    ref2 = _reference(x2, w1, b1, w2, b2)
    assert out2.shape == (batch2, output_dim)
    assert jnp.allclose(out2, ref2, atol=2e-2, rtol=2e-2), float(
        jnp.max(jnp.abs(out2 - ref2)))

    print("KERNEL_OK")
</pallas_src>

<mosaic_0001>
module attributes {stable_mosaic.version = 11 : i64} {
  func.func @mlp_kernel(%arg0: i32, %arg1: memref<8x3xf32, #tpu.memory_space<vmem>>, %arg2: memref<3x64xbf16, #tpu.memory_space<vmem>>, %arg3: memref<1x64xf32, #tpu.memory_space<vmem>>, %arg4: memref<64x3xbf16, #tpu.memory_space<vmem>>, %arg5: memref<1x3xf32, #tpu.memory_space<vmem>>, %arg6: memref<8x3xf32, #tpu.memory_space<vmem>>) attributes {dimension_semantics = [#tpu.dimension_semantics<parallel>], iteration_bounds = array<i64: 1>, scalar_prefetch = 0 : i64, scratch_operands = 0 : i64, tpu.core_type = #tpu.core_type<tc>, window_params = [{transform_indices = @transform_0, window_bounds = array<i64: 8, 3>}, {pipeline_mode = #tpu.pipeline_mode<synchronous>, transform_indices = @transform_1, window_bounds = array<i64: 3, 64>}, {pipeline_mode = #tpu.pipeline_mode<synchronous>, transform_indices = @transform_2, window_bounds = array<i64: 1, 64>}, {pipeline_mode = #tpu.pipeline_mode<synchronous>, transform_indices = @transform_3, window_bounds = array<i64: 64, 3>}, {pipeline_mode = #tpu.pipeline_mode<synchronous>, transform_indices = @transform_4, window_bounds = array<i64: 1, 3>}, {transform_indices = @transform_5, window_bounds = array<i64: 8, 3>}]} {
    %c0 = arith.constant 0 : index
    %c0_0 = arith.constant 0 : index
    %0 = vector.load %arg1[%c0, %c0_0] : memref<8x3xf32, #tpu.memory_space<vmem>>, vector<8x3xf32>
    %1 = arith.truncf %0 : vector<8x3xf32> to vector<8x3xbf16>
    %c0_1 = arith.constant 0 : index
    %c0_2 = arith.constant 0 : index
    %2 = vector.load %arg2[%c0_1, %c0_2] : memref<3x64xbf16, #tpu.memory_space<vmem>>, vector<3x64xbf16>
    %cst = arith.constant dense<0.000000e+00> : vector<8x64xf32>
    %3 = tpu.matmul %1, %2, %cst {dimension_numbers = #tpu.dot_dimension_numbers<[1], [0], [0], [1], [0, 0, 1, 1], [], []>} : vector<8x3xbf16>, vector<3x64xbf16>, vector<8x64xf32> -> vector<8x64xf32>
    %c0_3 = arith.constant 0 : index
    %c0_4 = arith.constant 0 : index
    %4 = vector.load %arg3[%c0_3, %c0_4] : memref<1x64xf32, #tpu.memory_space<vmem>>, vector<1x64xf32>
    %5 = vector.broadcast %4 : vector<1x64xf32> to vector<8x64xf32>
    %6 = arith.addf %3, %5 : vector<8x64xf32>
    %cst_5 = arith.constant 0.000000e+00 : f32
    %7 = vector.broadcast %cst_5 : f32 to vector<8x64xf32>
    %8 = arith.maximumf %6, %7 : vector<8x64xf32>
    %9 = arith.truncf %8 : vector<8x64xf32> to vector<8x64xbf16>
    %c0_6 = arith.constant 0 : index
    %c0_7 = arith.constant 0 : index
    %10 = vector.load %arg4[%c0_6, %c0_7] : memref<64x3xbf16, #tpu.memory_space<vmem>>, vector<64x3xbf16>
    %cst_8 = arith.constant dense<0.000000e+00> : vector<8x3xf32>
    %11 = tpu.matmul %9, %10, %cst_8 {dimension_numbers = #tpu.dot_dimension_numbers<[1], [0], [0], [1], [0, 0, 1, 1], [], []>} : vector<8x64xbf16>, vector<64x3xbf16>, vector<8x3xf32> -> vector<8x3xf32>
    %c0_9 = arith.constant 0 : index
    %c0_10 = arith.constant 0 : index
    %12 = vector.load %arg5[%c0_9, %c0_10] : memref<1x3xf32, #tpu.memory_space<vmem>>, vector<1x3xf32>
    %13 = vector.broadcast %12 : vector<1x3xf32> to vector<8x3xf32>
    %14 = arith.addf %11, %13 : vector<8x3xf32>
    %c0_11 = arith.constant 0 : index
    %c0_12 = arith.constant 0 : index
    %15 = vector.load %arg6[%c0_11, %c0_12] : memref<8x3xf32, #tpu.memory_space<vmem>>, vector<8x3xf32>
    tpu.vector_store %arg6[%c0_11, %c0_12], %14 {strides = array<i32>} : memref<8x3xf32, #tpu.memory_space<vmem>>, vector<8x3xf32>,
    return
  }
  func.func @transform_0(%arg0: i32) -> (i32, i32) {
    %c0_i32 = arith.constant 0 : i32
    %c0_i32_0 = arith.constant 0 : i32
    return %arg0, %c0_i32 : i32, i32
  }
  func.func @transform_1(%arg0: i32) -> (i32, i32) {
    %c0_i32 = arith.constant 0 : i32
    %c0_i32_0 = arith.constant 0 : i32
    %c0_i32_1 = arith.constant 0 : i32
    return %c0_i32, %c0_i32_0 : i32, i32
  }
  func.func @transform_2(%arg0: i32) -> (i32, i32) {
    %c0_i32 = arith.constant 0 : i32
    %c0_i32_0 = arith.constant 0 : i32
    %c0_i32_1 = arith.constant 0 : i32
    return %c0_i32, %c0_i32_0 : i32, i32
  }
  func.func @transform_3(%arg0: i32) -> (i32, i32) {
    %c0_i32 = arith.constant 0 : i32
    %c0_i32_0 = arith.constant 0 : i32
    %c0_i32_1 = arith.constant 0 : i32
    return %c0_i32, %c0_i32_0 : i32, i32
  }
  func.func @transform_4(%arg0: i32) -> (i32, i32) {
    %c0_i32 = arith.constant 0 : i32
    %c0_i32_0 = arith.constant 0 : i32
    %c0_i32_1 = arith.constant 0 : i32
    return %c0_i32, %c0_i32_0 : i32, i32
  }
  func.func @transform_5(%arg0: i32) -> (i32, i32) {
    %c0_i32 = arith.constant 0 : i32
    %c0_i32_0 = arith.constant 0 : i32
    return %arg0, %c0_i32 : i32, i32
  }
}

module attributes {stable_mosaic.version = 11 : i64} {
  func.func @mlp_kernel(%arg0: i32, %arg1: memref<8x3xf32, #tpu.memory_space<vmem>>, %arg2: memref<3x64xbf16, #tpu.memory_space<vmem>>, %arg3: memref<1x64xf32, #tpu.memory_space<vmem>>, %arg4: memref<64x3xbf16, #tpu.memory_space<vmem>>, %arg5: memref<1x3xf32, #tpu.memory_space<vmem>>, %arg6: memref<8x3xf32, #tpu.memory_space<vmem>>) attributes {dimension_semantics = [#tpu.dimension_semantics<parallel>], iteration_bounds = array<i64: 1>, scalar_prefetch = 0 : i64, scratch_operands = 0 : i64, tpu.core_type = #tpu.core_type<tc>, window_params = [{transform_indices = @transform_0, window_bounds = array<i64: 8, 3>}, {pipeline_mode = #tpu.pipeline_mode<synchronous>, transform_indices = @transform_1, window_bounds = array<i64: 3, 64>}, {pipeline_mode = #tpu.pipeline_mode<synchronous>, transform_indices = @transform_2, window_bounds = array<i64: 1, 64>}, {pipeline_mode = #tpu.pipeline_mode<synchronous>, transform_indices = @transform_3, window_bounds = array<i64: 64, 3>}, {pipeline_mode = #tpu.pipeline_mode<synchronous>, transform_indices = @transform_4, window_bounds = array<i64: 1, 3>}, {transform_indices = @transform_5, window_bounds = array<i64: 8, 3>}]} {
    %c0 = arith.constant 0 : index
    %c0_0 = arith.constant 0 : index
    %0 = vector.load %arg1[%c0, %c0_0] : memref<8x3xf32, #tpu.memory_space<vmem>>, vector<8x3xf32>
    %1 = arith.truncf %0 : vector<8x3xf32> to vector<8x3xbf16>
    %c0_1 = arith.constant 0 : index
    %c0_2 = arith.constant 0 : index
    %2 = vector.load %arg2[%c0_1, %c0_2] : memref<3x64xbf16, #tpu.memory_space<vmem>>, vector<3x64xbf16>
    %cst = arith.constant dense<0.000000e+00> : vector<8x64xf32>
    %3 = tpu.matmul %1, %2, %cst {dimension_numbers = #tpu.dot_dimension_numbers<[1], [0], [0], [1], [0, 0, 1, 1], [], []>} : vector<8x3xbf16>, vector<3x64xbf16>, vector<8x64xf32> -> vector<8x64xf32>
    %c0_3 = arith.constant 0 : index
    %c0_4 = arith.constant 0 : index
    %4 = vector.load %arg3[%c0_3, %c0_4] : memref<1x64xf32, #tpu.memory_space<vmem>>, vector<1x64xf32>
    %5 = vector.broadcast %4 : vector<1x64xf32> to vector<8x64xf32>
    %6 = arith.addf %3, %5 : vector<8x64xf32>
    %cst_5 = arith.constant 0.000000e+00 : f32
    %7 = vector.broadcast %cst_5 : f32 to vector<8x64xf32>
    %8 = arith.maximumf %6, %7 : vector<8x64xf32>
    %9 = arith.truncf %8 : vector<8x64xf32> to vector<8x64xbf16>
    %c0_6 = arith.constant 0 : index
    %c0_7 = arith.constant 0 : index
    %10 = vector.load %arg4[%c0_6, %c0_7] : memref<64x3xbf16, #tpu.memory_space<vmem>>, vector<64x3xbf16>
    %cst_8 = arith.constant dense<0.000000e+00> : vector<8x3xf32>
    %11 = tpu.matmul %9, %10, %cst_8 {dimension_numbers = #tpu.dot_dimension_numbers<[1], [0], [0], [1], [0, 0, 1, 1], [], []>} : vector<8x64xbf16>, vector<64x3xbf16>, vector<8x3xf32> -> vector<8x3xf32>
    %c0_9 = arith.constant 0 : index
    %c0_10 = arith.constant 0 : index
    %12 = vector.load %arg5[%c0_9, %c0_10] : memref<1x3xf32, #tpu.memory_space<vmem>>, vector<1x3xf32>
    %13 = vector.broadcast %12 : vector<1x3xf32> to vector<8x3xf32>
    %14 = arith.addf %11, %13 : vector<8x3xf32>
    %c0_11 = arith.constant 0 : index
    %c0_12 = arith.constant 0 : index
    %15 = vector.load %arg6[%c0_11, %c0_12] : memref<8x3xf32, #tpu.memory_space<vmem>>, vector<8x3xf32>
    tpu.vector_store %arg6[%c0_11, %c0_12], %14 {strides = array<i32>} : memref<8x3xf32, #tpu.memory_space<vmem>>, vector<8x3xf32>,
    return
  }
  func.func @transform_0(%arg0: i32) -> (i32, i32) {
    %c0_i32 = arith.constant 0 : i32
    %c0_i32_0 = arith.constant 0 : i32
    return %arg0, %c0_i32 : i32, i32
  }
  func.func @transform_1(%arg0: i32) -> (i32, i32) {
    %c0_i32 = arith.constant 0 : i32
    %c0_i32_0 = arith.constant 0 : i32
    %c0_i32_1 = arith.constant 0 : i32
    return %c0_i32, %c0_i32_0 : i32, i32
  }
  func.func @transform_2(%arg0: i32) -> (i32, i32) {
    %c0_i32 = arith.constant 0 : i32
    %c0_i32_0 = arith.constant 0 : i32
    %c0_i32_1 = arith.constant 0 : i32
    return %c0_i32, %c0_i32_0 : i32, i32
  }
  func.func @transform_3(%arg0: i32) -> (i32, i32) {
    %c0_i32 = arith.constant 0 : i32
    %c0_i32_0 = arith.constant 0 : i32
    %c0_i32_1 = arith.constant 0 : i32
    return %c0_i32, %c0_i32_0 : i32, i32
  }
  func.func @transform_4(%arg0: i32) -> (i32, i32) {
    %c0_i32 = arith.constant 0 : i32
    %c0_i32_0 = arith.constant 0 : i32
    %c0_i32_1 = arith.constant 0 : i32
    return %c0_i32, %c0_i32_0 : i32, i32
  }
  func.func @transform_5(%arg0: i32) -> (i32, i32) {
    %c0_i32 = arith.constant 0 : i32
    %c0_i32_0 = arith.constant 0 : i32
    return %arg0, %c0_i32 : i32, i32
  }
}

</mosaic_0001>

<bundles_post_ra>
// kernel: tpu_custom_call.1
= control target key start
LH: loop header
LB: loop body
LE: loop exit
PB: predicated region body
PF: predicated region fallthrough
CT: control target
= control target key end

     0   :  { %vm35_vm0 = vcmask 1040384   ;;  %vm36_vm1 = vcmask 1041408   ;;  %v212_v0 = vmov 0.0   ;;  %v213_v2 = vmov 65535   ;;  %s274_s1 = inlined_call_operand.vmem [shape: bf16[3,64], index: 1, kind: input, shape index: {}]   ;;  %s275_s0 = inlined_call_operand.vmem [shape: f32[8,3], index: 0, kind: input, shape index: {}]   ;;  %s276_s3 = inlined_call_operand.vmem [shape: bf16[64,3], index: 3, kind: input, shape index: {}]   ;;  %s277_s2 = inlined_call_operand.vmem [shape: f32[1,64], index: 2, kind: input, shape index: {}]   ;;  %s278_s4 = inlined_call_operand.vmem [shape: f32[1,3], index: 4, kind: input, shape index: {}]   ;;  %s279_s5 = inlined_call_operand.vmem [shape: f32[8,3], index: 5, kind: output, shape index: {}]  }
   0x1   :  { %187 = vmatprep.subr.bf16.mxu0 %v212_v0  ;;  %v23_v1 = vld [vmem:[%s274_s1] sm:$0x3]  ;;  %v37_v3 = vsel %vm35_vm0, 4294967295, %v213_v2  ;;  %193 = vmatprep.subr.bf16.mxu1 %v212_v0  ;;  %vm214_vm2 = vmmov 0   ;;  %v208_v6 = vld [vmem:[%s276_s3 + $0x18] sm:$0xff]   ;;  %v209_v9 = vld [vmem:[%s276_s3 + $0x10] sm:$0xff]  }
   0x2   :  { %v21_v4 = vld [vmem:[%s275_s0] sm:$0xff]  ;;  %v38_v5 = vsel %vm36_vm1, %v37_v3, 0  ;;  %189 = vmatprep.mubr.msk.bf16.mxu0 %vm214_vm2, %v212_v0  ;;  %201 = vmatprep.mubr.msk.bf16.mxu1 %vm214_vm2, %v212_v0  ;;  %vm31_vm3 = vcmask 23552   ;;  %v210_v10 = vld [vmem:[%s276_s3 + $0x8] sm:$0xff]   ;;  %vm123_vm4 = vcmask 523264  }
   0x3   :  { %v40_v7 = vand.u32 %v38_v5, %v23_v1  ;;  %v22_v8 = vpack.c.bf16 %v21_v4, %v21_v4  ;;  %194 = vmatpush3.bf16.msra.mxu1 %v208_v6  ;;  %v211_v11 = vld [vmem:[%s276_s3] sm:$0xff]  }
   0x4   :  { %195 = vmatprep.subr.bf16.mxu1 %v212_v0  ;;  %v172_v12 = vld [vmem:[%s277_s2] ss:$0 sm:$0xff] }
   0x5   :  { %188 = vmatpush3.bf16.msra.mxu0 %v40_v7  ;;  %v174_v20 = vld [vmem:[%s278_s4] ss:$0 sm:$0xff] }
   0x7   :  { %196 = vmatpush3.bf16.msra.mxu1 %v209_v9 }
   0x8   :  { %190 = vmatmul.mubr.msk.bf16.vlgmr.msra.gmra.mxu0 %vm31_vm3, %v22_v8  ;;  %197 = vmatprep.subr.bf16.mxu1 %v212_v0 }
   0xb   :  { %198 = vmatpush3.bf16.msra.mxu1 %v210_v10 }
   0xc   :  { %199 = vmatprep.subr.bf16.mxu1 %v212_v0 }
   0xf   :  { %200 = vmatpush3.bf16.msra.mxu1 %v211_v11 }
  0xc8   :  { %v76_v13 = vpop.f32.mrf.mxu0 }
  0xc9   :  { %v77_v14 = vadd.f32 %v172_v12, %v76_v13 }
  0xca   :  { %v191_v15 = vpop.f32.mrf.mxu0 }
  0xcb   :  { %v82_v16 = vmax.f32 %v77_v14, 0.0 }
  0xcc   :  { %v79_v17 = vpop.f32.mrf.mxu0 }
  0xcd   :  { %v83_v18 = vpack.c.bf16 %v82_v16, %v82_v16 }
  0xce   :  { %v192_v19 = vpop.f32.mrf.mxu0 }
  0xcf   :  { %202 = vmatmul.mubr.msk.bf16.vlgmr.msra.gmra.mxu1 %vm123_vm4, %v83_v18 }
 0x18f   :  { %v161_v21 = vpop.f32.mrf.mxu1 }
 0x190   :  { %v162_v22 = vadd.f32 %v174_v20, %v161_v21 }
 0x191   :  { %v203_v23 = vpop.f32.mrf.mxu1 }
 0x192   :  { %167 = vst.msk [vmem:[%s279_s5] sm:$0xff] %vm31_vm3, %v162_v22 }
 0x193   :  { %v164_v24 = vpop.f32.mrf.mxu1 }
 0x195   :  { %v204_v25 = vpop.f32.mrf.mxu1 }

// kernel: tpu_custom_call.1
= control target key start
LH: loop header
LB: loop body
LE: loop exit
PB: predicated region body
PF: predicated region fallthrough
CT: control target
= control target key end

     0   :  { %vm35_vm0 = vcmask 1040384   ;;  %vm36_vm1 = vcmask 1041408   ;;  %v212_v0 = vmov 0.0   ;;  %v213_v2 = vmov 65535   ;;  %s274_s1 = inlined_call_operand.vmem [shape: bf16[3,64], index: 1, kind: input, shape index: {}]   ;;  %s275_s0 = inlined_call_operand.vmem [shape: f32[8,3], index: 0, kind: input, shape index: {}]   ;;  %s276_s3 = inlined_call_operand.vmem [shape: bf16[64,3], index: 3, kind: input, shape index: {}]   ;;  %s277_s2 = inlined_call_operand.vmem [shape: f32[1,64], index: 2, kind: input, shape index: {}]   ;;  %s278_s4 = inlined_call_operand.vmem [shape: f32[1,3], index: 4, kind: input, shape index: {}]   ;;  %s279_s5 = inlined_call_operand.vmem [shape: f32[8,3], index: 5, kind: output, shape index: {}]  }
   0x1   :  { %187 = vmatprep.subr.bf16.mxu0 %v212_v0  ;;  %v23_v1 = vld [vmem:[%s274_s1] sm:$0x3]  ;;  %v37_v3 = vsel %vm35_vm0, 4294967295, %v213_v2  ;;  %193 = vmatprep.subr.bf16.mxu1 %v212_v0  ;;  %vm214_vm2 = vmmov 0   ;;  %v208_v6 = vld [vmem:[%s276_s3 + $0x18] sm:$0xff]   ;;  %v209_v9 = vld [vmem:[%s276_s3 + $0x10] sm:$0xff]  }
   0x2   :  { %v21_v4 = vld [vmem:[%s275_s0] sm:$0xff]  ;;  %v38_v5 = vsel %vm36_vm1, %v37_v3, 0  ;;  %189 = vmatprep.mubr.msk.bf16.mxu0 %vm214_vm2, %v212_v0  ;;  %201 = vmatprep.mubr.msk.bf16.mxu1 %vm214_vm2, %v212_v0  ;;  %vm31_vm3 = vcmask 23552   ;;  %v210_v10 = vld [vmem:[%s276_s3 + $0x8] sm:$0xff]   ;;  %vm123_vm4 = vcmask 523264  }
   0x3   :  { %v40_v7 = vand.u32 %v38_v5, %v23_v1  ;;  %v22_v8 = vpack.c.bf16 %v21_v4, %v21_v4  ;;  %194 = vmatpush3.bf16.msra.mxu1 %v208_v6  ;;  %v211_v11 = vld [vmem:[%s276_s3] sm:$0xff]  }
   0x4   :  { %195 = vmatprep.subr.bf16.mxu1 %v212_v0  ;;  %v172_v12 = vld [vmem:[%s277_s2] ss:$0 sm:$0xff] }
   0x5   :  { %188 = vmatpush3.bf16.msra.mxu0 %v40_v7  ;;  %v174_v20 = vld [vmem:[%s278_s4] ss:$0 sm:$0xff] }
   0x7   :  { %196 = vmatpush3.bf16.msra.mxu1 %v209_v9 }
   0x8   :  { %190 = vmatmul.mubr.msk.bf16.vlgmr.msra.gmra.mxu0 %vm31_vm3, %v22_v8  ;;  %197 = vmatprep.subr.bf16.mxu1 %v212_v0 }
   0xb   :  { %198 = vmatpush3.bf16.msra.mxu1 %v210_v10 }
   0xc   :  { %199 = vmatprep.subr.bf16.mxu1 %v212_v0 }
   0xf   :  { %200 = vmatpush3.bf16.msra.mxu1 %v211_v11 }
  0xc8   :  { %v76_v13 = vpop.f32.mrf.mxu0 }
  0xc9   :  { %v77_v14 = vadd.f32 %v172_v12, %v76_v13 }
  0xca   :  { %v191_v15 = vpop.f32.mrf.mxu0 }
  0xcb   :  { %v82_v16 = vmax.f32 %v77_v14, 0.0 }
  0xcc   :  { %v79_v17 = vpop.f32.mrf.mxu0 }
  0xcd   :  { %v83_v18 = vpack.c.bf16 %v82_v16, %v82_v16 }
  0xce   :  { %v192_v19 = vpop.f32.mrf.mxu0 }
  0xcf   :  { %202 = vmatmul.mubr.msk.bf16.vlgmr.msra.gmra.mxu1 %vm123_vm4, %v83_v18 }
 0x18f   :  { %v161_v21 = vpop.f32.mrf.mxu1 }
 0x190   :  { %v162_v22 = vadd.f32 %v174_v20, %v161_v21 }
 0x191   :  { %v203_v23 = vpop.f32.mrf.mxu1 }
 0x192   :  { %167 = vst.msk [vmem:[%s279_s5] sm:$0xff] %vm31_vm3, %v162_v22 }
 0x193   :  { %v164_v24 = vpop.f32.mrf.mxu1 }
 0x195   :  { %v204_v25 = vpop.f32.mrf.mxu1 }

</bundles_post_ra>
